<compile_context>
chip_gen: v7x
topology: tpu7x:2x2x1
jax: 0.10.0
libtpu: 0.0.40
codegen_flags: <defaults>
</compile_context>

<pallas_src>
import math
import functools

import jax
import jax.numpy as jnp
from jax import lax
from jax.experimental import pallas as pl
from jax.experimental.pallas import tpu as pltpu


def _box_attn_kernel(q_ref, k_ref, v_ref, box_ref,
                     wq_ref, bq_ref, wk_ref, bk_ref, wv_ref, bv_ref,
                     wo_ref, bo_ref, out_ref, *, h, d_k, d_v, scale):
    """One grid point = one batch element.  All heads handled in VMEM."""
    f32 = jnp.float32

    x_q = q_ref[0]                       # (nq, d_model)
    x_k = k_ref[0]                       # (nk, d_model)
    x_v = v_ref[0]                       # (nk, d_model)

    # All-head projections: one wide MXU pass each, f32 accumulation.
    q_all = jnp.dot(x_q, wq_ref[...], preferred_element_type=f32) + bq_ref[...]   # (nq, h*d_k)
    k_all = jnp.dot(x_k, wk_ref[...], preferred_element_type=f32) + bk_ref[...]   # (nk, h*d_k)
    v_all = jnp.dot(x_v, wv_ref[...], preferred_element_type=f32) + bv_ref[...]   # (nk, h*d_v)

    # Per-head attention.  h is a small compile-time constant -> unrolled loop with
    # static lane slices of the already-resident projections (2-D ops only).
    head_outs = []
    for hh in range(h):
        q_h = q_all[:, hh * d_k:(hh + 1) * d_k]                   # (nq, d_k)
        k_h = k_all[:, hh * d_k:(hh + 1) * d_k]                   # (nk, d_k)
        v_h = v_all[:, hh * d_v:(hh + 1) * d_v]                   # (nk, d_v)

        # att = q k^T / sqrt(d_k): contract on d_k without materializing k^T.
        att = lax.dot_general(q_h, k_h, (((1,), (1,)), ((), ())),
                              preferred_element_type=f32) * scale  # (nq, nk)

        # softmax(log(clamp(box, 1e-6)) + att)
        #   == clamp(box, 1e-6) * exp(att - rowmax(att)) / row-sum(same)
        # (the stabilization shift cancels in the quotient; exp term <= 1.)
        box_h = jnp.maximum(box_ref[0, hh].astype(f32), 1e-6)      # (nq, nk)
        p = box_h * jnp.exp(att - jnp.max(att, axis=-1, keepdims=True))
        w = p * pl.reciprocal(jnp.sum(p, axis=-1, keepdims=True), approx=True)
        # TODO(synk): attention_weights / attention_mask (both None in this path)
        # would be an extra multiplicative tile and a masked_fill(-inf) here;
        # nn.Dropout is identity at inference and is omitted.

        head_outs.append(jnp.dot(w, v_h, preferred_element_type=f32))  # (nq, d_v)

    concat = jnp.concatenate(head_outs, axis=-1)                       # (nq, h*d_v)

    # Single wide output projection (replaces per-head head @ Wo[h] accumulation).
    out = jnp.dot(concat, wo_ref[...], preferred_element_type=f32) + bo_ref[...]
    out_ref[0] = out.astype(out_ref.dtype)


def scaled_dot_product_box_attention(queries, keys, values, box,
                                     wq, bq, wk, bk, wv, bv, wo, bo,
                                     *, h, d_k, d_v,
                                     attention_mask=None, attention_weights=None):
    """Pallas forward of ScaledDotProductWithBoxAttention (mask=None path).

    queries/keys/values: (B, nq|nk, d_model); box: (B, h, nq, nk).
    wq/wk: (d_model, h*d_k); wv: (d_model, h*d_v); wo: (h*d_v, d_model).
    Perf note: `box` is the dominant HBM stream (B*h*nq*nk elems); passing it
    pre-cast to bfloat16 halves that traffic (the kernel upcasts in VMEM).
    """
    assert attention_mask is None and attention_weights is None, \
        "only the attention_mask=None / attention_weights=None path is implemented"

    B, nq, d_model = queries.shape
    nk = keys.shape[1]

    bq2 = bq.reshape(1, h * d_k)
    bk2 = bk.reshape(1, h * d_k)
    bv2 = bv.reshape(1, h * d_v)
    bo2 = bo.reshape(1, d_model)

    kernel = functools.partial(_box_attn_kernel, h=h, d_k=d_k, d_v=d_v,
                               scale=1.0 / math.sqrt(d_k))

    # TODO(synk): for long sequences, add a flash-style nk tile axis (online
    # softmax) so the (h, nq, nk) box block fits v7x's 64 MiB VMEM.
    out = pl.pallas_call(
        kernel,
        out_shape=jax.ShapeDtypeStruct((B, nq, d_model), queries.dtype),
        grid_spec=pltpu.PrefetchScalarGridSpec(
            num_scalar_prefetch=0,
            grid=(B,),
            in_specs=[
                pl.BlockSpec((1, nq, d_model),   lambda b: (b, 0, 0)),     # queries
                pl.BlockSpec((1, nk, d_model),   lambda b: (b, 0, 0)),     # keys
                pl.BlockSpec((1, nk, d_model),   lambda b: (b, 0, 0)),     # values
                pl.BlockSpec((1, h, nq, nk),     lambda b: (b, 0, 0, 0)),  # box bias
                pl.BlockSpec((d_model, h * d_k), lambda b: (0, 0)),        # Wq
                pl.BlockSpec((1, h * d_k),       lambda b: (0, 0)),        # bq
                pl.BlockSpec((d_model, h * d_k), lambda b: (0, 0)),        # Wk
                pl.BlockSpec((1, h * d_k),       lambda b: (0, 0)),        # bk
                pl.BlockSpec((d_model, h * d_v), lambda b: (0, 0)),        # Wv
                pl.BlockSpec((1, h * d_v),       lambda b: (0, 0)),        # bv
                pl.BlockSpec((h * d_v, d_model), lambda b: (0, 0)),        # Wo
                pl.BlockSpec((1, d_model),       lambda b: (0, 0)),        # bo
            ],
            out_specs=pl.BlockSpec((1, nq, d_model), lambda b: (b, 0, 0)),
        ),
        compiler_params=pltpu.CompilerParams(
            # Batch axis parallel -> megacore-shardable on v7x (no-op elsewhere).
            dimension_semantics=("parallel",),
            # Explicit scoped-VMEM budget (v5e default is only 16 MiB); leaves
            # headroom under v7x's 64 MiB physical VMEM.
            vmem_limit_bytes=48 * 1024 * 1024,
        ),
    )(queries, keys, values, box, wq, bq2, wk, bk2, wv, bv2, wo, bo2)
    return out


def _reference(queries, keys, values, box, wq, bq, wk, bk, wv, bv, wo, bo,
               *, h, d_k, d_v):
    """Pure-JAX port of the PyTorch forward (mask=None, eval-mode dropout)."""
    b_s, nq, _ = queries.shape
    nk = keys.shape[1]
    q = (queries @ wq + bq).reshape(b_s, nq, h, d_k).transpose(0, 2, 1, 3)   # (B,h,nq,d_k)
    k = (keys @ wk + bk).reshape(b_s, nk, h, d_k).transpose(0, 2, 3, 1)      # (B,h,d_k,nk)
    v = (values @ wv + bv).reshape(b_s, nk, h, d_v).transpose(0, 2, 1, 3)    # (B,h,nk,d_v)
    att = jnp.einsum('bhqd,bhdk->bhqk', q, k) / math.sqrt(d_k)
    w_mn = jnp.log(jnp.maximum(box, 1e-6)) + att
    w_mn = jax.nn.softmax(w_mn, axis=-1)
    out = jnp.einsum('bhqk,bhkd->bhqd', w_mn, v)
    out = out.transpose(0, 2, 1, 3).reshape(b_s, nq, h * d_v)
    return out @ wo + bo


if __name__ == "__main__":
    key = jax.random.PRNGKey(0)
    B, nq, nk = 2, 8, 8
    d_model, d_k, d_v, h = 32, 8, 8, 4

    ks = jax.random.split(key, 12)
    queries = jax.random.normal(ks[0], (B, nq, d_model), jnp.float32)
    keys_in = jax.random.normal(ks[1], (B, nk, d_model), jnp.float32)
    values  = jax.random.normal(ks[2], (B, nk, d_model), jnp.float32)
    # Box relation embedding (geometric attention weights, non-negative).
    box = jax.random.uniform(ks[3], (B, h, nq, nk), jnp.float32, minval=0.0, maxval=2.0)

    def xavier(k_, fan_in, fan_out):
        lim = math.sqrt(6.0 / (fan_in + fan_out))
        return jax.random.uniform(k_, (fan_in, fan_out), jnp.float32, -lim, lim)

    wq = xavier(ks[4], d_model, h * d_k)
    wk = xavier(ks[5], d_model, h * d_k)
    wv = xavier(ks[6], d_model, h * d_v)
    wo = xavier(ks[7], h * d_v, d_model)
    # Random (small) biases so the bias path is actually exercised.
    bq = 0.1 * jax.random.normal(ks[8],  (h * d_k,), jnp.float32)
    bk = 0.1 * jax.random.normal(ks[9],  (h * d_k,), jnp.float32)
    bv = 0.1 * jax.random.normal(ks[10], (h * d_v,), jnp.float32)
    bo = 0.1 * jax.random.normal(ks[11], (d_model,), jnp.float32)

    out = scaled_dot_product_box_attention(
        queries, keys_in, values, box, wq, bq, wk, bk, wv, bv, wo, bo,
        h=h, d_k=d_k, d_v=d_v)
    out = jax.block_until_ready(out)

    ref = _reference(queries, keys_in, values, box, wq, bq, wk, bk, wv, bv, wo, bo,
                     h=h, d_k=d_k, d_v=d_v)
    assert out.shape == (B, nq, d_model), out.shape
    # Tolerance allows for default-precision (bf16-pass) MXU matmuls, the
    # multiplicative-box softmax rewrite and the approx reciprocal; semantic bugs
    # (wrong softmax axis, missing box bias, mis-sliced heads) are >> this.
    err = float(jnp.max(jnp.abs(out - ref)))
    assert jnp.allclose(out, ref, atol=2e-2, rtol=2e-2), f"mismatch vs reference: {err}"

    print("KERNEL_OK")
</pallas_src>

<mosaic_0001>
module attributes {stable_mosaic.version = 11 : i64} {
  func.func @_box_attn_kernel(%arg0: i32, %arg1: memref<1x8x32xf32, #tpu.memory_space<vmem>>, %arg2: memref<1x8x32xf32, #tpu.memory_space<vmem>>, %arg3: memref<1x8x32xf32, #tpu.memory_space<vmem>>, %arg4: memref<1x4x8x8xf32, #tpu.memory_space<vmem>>, %arg5: memref<32x32xf32, #tpu.memory_space<vmem>>, %arg6: memref<1x32xf32, #tpu.memory_space<vmem>>, %arg7: memref<32x32xf32, #tpu.memory_space<vmem>>, %arg8: memref<1x32xf32, #tpu.memory_space<vmem>>, %arg9: memref<32x32xf32, #tpu.memory_space<vmem>>, %arg10: memref<1x32xf32, #tpu.memory_space<vmem>>, %arg11: memref<32x32xf32, #tpu.memory_space<vmem>>, %arg12: memref<1x32xf32, #tpu.memory_space<vmem>>, %arg13: memref<1x8x32xf32, #tpu.memory_space<vmem>>) attributes {dimension_semantics = [#tpu.dimension_semantics<parallel>], iteration_bounds = array<i64: 2>, scalar_prefetch = 0 : i64, scratch_operands = 0 : i64, tpu.core_type = #tpu.core_type<tc>, window_params = [{transform_indices = @transform_0, window_bounds = array<i64: 1, 8, 32>}, {transform_indices = @transform_1, window_bounds = array<i64: 1, 8, 32>}, {transform_indices = @transform_2, window_bounds = array<i64: 1, 8, 32>}, {transform_indices = @transform_3, window_bounds = array<i64: 1, 4, 8, 8>}, {pipeline_mode = #tpu.pipeline_mode<synchronous>, transform_indices = @transform_4, window_bounds = array<i64: 32, 32>}, {pipeline_mode = #tpu.pipeline_mode<synchronous>, transform_indices = @transform_5, window_bounds = array<i64: 1, 32>}, {pipeline_mode = #tpu.pipeline_mode<synchronous>, transform_indices = @transform_6, window_bounds = array<i64: 32, 32>}, {pipeline_mode = #tpu.pipeline_mode<synchronous>, transform_indices = @transform_7, window_bounds = array<i64: 1, 32>}, {pipeline_mode = #tpu.pipeline_mode<synchronous>, transform_indices = @transform_8, window_bounds = array<i64: 32, 32>}, {pipeline_mode = #tpu.pipeline_mode<synchronous>, transform_indices = @transform_9, window_bounds = array<i64: 1, 32>}, {pipeline_mode = #tpu.pipeline_mode<synchronous>, transform_indices = @transform_10, window_bounds = array<i64: 32, 32>}, {pipeline_mode = #tpu.pipeline_mode<synchronous>, transform_indices = @transform_11, window_bounds = array<i64: 1, 32>}, {transform_indices = @transform_12, window_bounds = array<i64: 1, 8, 32>}]} {
    %c0 = arith.constant 0 : index
    %c0_0 = arith.constant 0 : index
    %c0_1 = arith.constant 0 : index
    %0 = vector.load %arg1[%c0, %c0_0, %c0_1] : memref<1x8x32xf32, #tpu.memory_space<vmem>>, vector<1x8x32xf32>
    %1 = vector.shape_cast %0 : vector<1x8x32xf32> to vector<8x32xf32>
    %c0_2 = arith.constant 0 : index
    %c0_3 = arith.constant 0 : index
    %c0_4 = arith.constant 0 : index
    %2 = vector.load %arg2[%c0_2, %c0_3, %c0_4] : memref<1x8x32xf32, #tpu.memory_space<vmem>>, vector<1x8x32xf32>
    %3 = vector.shape_cast %2 : vector<1x8x32xf32> to vector<8x32xf32>
    %c0_5 = arith.constant 0 : index
    %c0_6 = arith.constant 0 : index
    %c0_7 = arith.constant 0 : index
    %4 = vector.load %arg3[%c0_5, %c0_6, %c0_7] : memref<1x8x32xf32, #tpu.memory_space<vmem>>, vector<1x8x32xf32>
    %5 = vector.shape_cast %4 : vector<1x8x32xf32> to vector<8x32xf32>
    %c0_8 = arith.constant 0 : index
    %c0_9 = arith.constant 0 : index
    %6 = vector.load %arg5[%c0_8, %c0_9] : memref<32x32xf32, #tpu.memory_space<vmem>>, vector<32x32xf32>
    %cst = arith.constant dense<0.000000e+00> : vector<8x32xf32>
    %7 = tpu.matmul %1, %6, %cst {dimension_numbers = #tpu.dot_dimension_numbers<[1], [0], [0], [1], [0, 0, 1, 1], [], []>} : vector<8x32xf32>, vector<32x32xf32>, vector<8x32xf32> -> vector<8x32xf32>
    %c0_10 = arith.constant 0 : index
    %c0_11 = arith.constant 0 : index
    %8 = vector.load %arg6[%c0_10, %c0_11] : memref<1x32xf32, #tpu.memory_space<vmem>>, vector<1x32xf32>
    %9 = vector.broadcast %8 : vector<1x32xf32> to vector<8x32xf32>
    %10 = arith.addf %7, %9 : vector<8x32xf32>
    %c0_12 = arith.constant 0 : index
    %c0_13 = arith.constant 0 : index
    %11 = vector.load %arg7[%c0_12, %c0_13] : memref<32x32xf32, #tpu.memory_space<vmem>>, vector<32x32xf32>
    %cst_14 = arith.constant dense<0.000000e+00> : vector<8x32xf32>
    %12 = tpu.matmul %3, %11, %cst_14 {dimension_numbers = #tpu.dot_dimension_numbers<[1], [0], [0], [1], [0, 0, 1, 1], [], []>} : vector<8x32xf32>, vector<32x32xf32>, vector<8x32xf32> -> vector<8x32xf32>
    %c0_15 = arith.constant 0 : index
    %c0_16 = arith.constant 0 : index
    %13 = vector.load %arg8[%c0_15, %c0_16] : memref<1x32xf32, #tpu.memory_space<vmem>>, vector<1x32xf32>
    %14 = vector.broadcast %13 : vector<1x32xf32> to vector<8x32xf32>
    %15 = arith.addf %12, %14 : vector<8x32xf32>
    %c0_17 = arith.constant 0 : index
    %c0_18 = arith.constant 0 : index
    %16 = vector.load %arg9[%c0_17, %c0_18] : memref<32x32xf32, #tpu.memory_space<vmem>>, vector<32x32xf32>
    %cst_19 = arith.constant dense<0.000000e+00> : vector<8x32xf32>
    %17 = tpu.matmul %5, %16, %cst_19 {dimension_numbers = #tpu.dot_dimension_numbers<[1], [0], [0], [1], [0, 0, 1, 1], [], []>} : vector<8x32xf32>, vector<32x32xf32>, vector<8x32xf32> -> vector<8x32xf32>
    %c0_20 = arith.constant 0 : index
    %c0_21 = arith.constant 0 : index
    %18 = vector.load %arg10[%c0_20, %c0_21] : memref<1x32xf32, #tpu.memory_space<vmem>>, vector<1x32xf32>
    %19 = vector.broadcast %18 : vector<1x32xf32> to vector<8x32xf32>
    %20 = arith.addf %17, %19 : vector<8x32xf32>
    %21 = vector.extract_strided_slice %10 {offsets = [0, 0], sizes = [8, 8], strides = [1, 1]} : vector<8x32xf32> to vector<8x8xf32>
    %22 = vector.extract_strided_slice %15 {offsets = [0, 0], sizes = [8, 8], strides = [1, 1]} : vector<8x32xf32> to vector<8x8xf32>
    %23 = vector.extract_strided_slice %20 {offsets = [0, 0], sizes = [8, 8], strides = [1, 1]} : vector<8x32xf32> to vector<8x8xf32>
    %cst_22 = arith.constant dense<0.000000e+00> : vector<8x8xf32>
    %24 = tpu.matmul %21, %22, %cst_22 {dimension_numbers = #tpu.dot_dimension_numbers<[1], [1], [0], [0], [0, 0, 1, 0], [], []>} : vector<8x8xf32>, vector<8x8xf32>, vector<8x8xf32> -> vector<8x8xf32>
    %cst_23 = arith.constant 0.353553385 : f32
    %25 = vector.broadcast %cst_23 : f32 to vector<8x8xf32>
    %26 = arith.mulf %24, %25 : vector<8x8xf32>
    %c0_24 = arith.constant 0 : index
    %c0_25 = arith.constant 0 : index
    %c0_26 = arith.constant 0 : index
    %c0_27 = arith.constant 0 : index
    %27 = vector.load %arg4[%c0_24, %c0_25, %c0_26, %c0_27] : memref<1x4x8x8xf32, #tpu.memory_space<vmem>>, vector<1x1x8x8xf32>
    %28 = vector.shape_cast %27 : vector<1x1x8x8xf32> to vector<8x8xf32>
    %cst_28 = arith.constant 9.99999997E-7 : f32
    %29 = vector.broadcast %cst_28 : f32 to vector<8x8xf32>
    %30 = arith.maximumf %28, %29 : vector<8x8xf32>
    %cst_29 = arith.constant dense<0xFF800000> : vector<8xf32>
    %31 = vector.multi_reduction <maximumf>, %26, %cst_29 [1] : vector<8x8xf32> to vector<8xf32>
    %32 = vector.shape_cast %31 : vector<8xf32> to vector<8x1xf32>
    %33 = vector.broadcast %32 : vector<8x1xf32> to vector<8x8xf32>
    %34 = arith.subf %26, %33 : vector<8x8xf32>
    %35 = math.exp %34 : vector<8x8xf32>
    %36 = arith.mulf %30, %35 : vector<8x8xf32>
    %cst_30 = arith.constant dense<0.000000e+00> : vector<8xf32>
    %37 = vector.multi_reduction <add>, %36, %cst_30 [1] : vector<8x8xf32> to vector<8xf32>
    %38 = vector.shape_cast %37 : vector<8xf32> to vector<8x1xf32>
    %39 = tpu.reciprocal %38 {approx = true} : vector<8x1xf32> -> vector<8x1xf32>
    %40 = vector.broadcast %39 : vector<8x1xf32> to vector<8x8xf32>
    %41 = arith.mulf %36, %40 : vector<8x8xf32>
    %cst_31 = arith.constant dense<0.000000e+00> : vector<8x8xf32>
    %42 = tpu.matmul %41, %23, %cst_31 {dimension_numbers = #tpu.dot_dimension_numbers<[1], [0], [0], [1], [0, 0, 1, 1], [], []>} : vector<8x8xf32>, vector<8x8xf32>, vector<8x8xf32> -> vector<8x8xf32>
    %43 = vector.extract_strided_slice %10 {offsets = [0, 8], sizes = [8, 8], strides = [1, 1]} : vector<8x32xf32> to vector<8x8xf32>
    %44 = vector.extract_strided_slice %15 {offsets = [0, 8], sizes = [8, 8], strides = [1, 1]} : vector<8x32xf32> to vector<8x8xf32>
    %45 = vector.extract_strided_slice %20 {offsets = [0, 8], sizes = [8, 8], strides = [1, 1]} : vector<8x32xf32> to vector<8x8xf32>
    %cst_32 = arith.constant dense<0.000000e+00> : vector<8x8xf32>
    %46 = tpu.matmul %43, %44, %cst_32 {dimension_numbers = #tpu.dot_dimension_numbers<[1], [1], [0], [0], [0, 0, 1, 0], [], []>} : vector<8x8xf32>, vector<8x8xf32>, vector<8x8xf32> -> vector<8x8xf32>
    %cst_33 = arith.constant 0.353553385 : f32
    %47 = vector.broadcast %cst_33 : f32 to vector<8x8xf32>
    %48 = arith.mulf %46, %47 : vector<8x8xf32>
    %c0_34 = arith.constant 0 : index
    %c1 = arith.constant 1 : index
    %c0_35 = arith.constant 0 : index
    %c0_36 = arith.constant 0 : index
    %49 = vector.load %arg4[%c0_34, %c1, %c0_35, %c0_36] : memref<1x4x8x8xf32, #tpu.memory_space<vmem>>, vector<1x1x8x8xf32>
    %50 = vector.shape_cast %49 : vector<1x1x8x8xf32> to vector<8x8xf32>
    %cst_37 = arith.constant 9.99999997E-7 : f32
    %51 = vector.broadcast %cst_37 : f32 to vector<8x8xf32>
    %52 = arith.maximumf %50, %51 : vector<8x8xf32>
    %cst_38 = arith.constant dense<0xFF800000> : vector<8xf32>
    %53 = vector.multi_reduction <maximumf>, %48, %cst_38 [1] : vector<8x8xf32> to vector<8xf32>
    %54 = vector.shape_cast %53 : vector<8xf32> to vector<8x1xf32>
    %55 = vector.broadcast %54 : vector<8x1xf32> to vector<8x8xf32>
    %56 = arith.subf %48, %55 : vector<8x8xf32>
    %57 = math.exp %56 : vector<8x8xf32>
    %58 = arith.mulf %52, %57 : vector<8x8xf32>
    %cst_39 = arith.constant dense<0.000000e+00> : vector<8xf32>
    %59 = vector.multi_reduction <add>, %58, %cst_39 [1] : vector<8x8xf32> to vector<8xf32>
    %60 = vector.shape_cast %59 : vector<8xf32> to vector<8x1xf32>
    %61 = tpu.reciprocal %60 {approx = true} : vector<8x1xf32> -> vector<8x1xf32>
    %62 = vector.broadcast %61 : vector<8x1xf32> to vector<8x8xf32>
    %63 = arith.mulf %58, %62 : vector<8x8xf32>
    %cst_40 = arith.constant dense<0.000000e+00> : vector<8x8xf32>
    %64 = tpu.matmul %63, %45, %cst_40 {dimension_numbers = #tpu.dot_dimension_numbers<[1], [0], [0], [1], [0, 0, 1, 1], [], []>} : vector<8x8xf32>, vector<8x8xf32>, vector<8x8xf32> -> vector<8x8xf32>
    %65 = vector.extract_strided_slice %10 {offsets = [0, 16], sizes = [8, 8], strides = [1, 1]} : vector<8x32xf32> to vector<8x8xf32>
    %66 = vector.extract_strided_slice %15 {offsets = [0, 16], sizes = [8, 8], strides = [1, 1]} : vector<8x32xf32> to vector<8x8xf32>
    %67 = vector.extract_strided_slice %20 {offsets = [0, 16], sizes = [8, 8], strides = [1, 1]} : vector<8x32xf32> to vector<8x8xf32>
    %cst_41 = arith.constant dense<0.000000e+00> : vector<8x8xf32>
    %68 = tpu.matmul %65, %66, %cst_41 {dimension_numbers = #tpu.dot_dimension_numbers<[1], [1], [0], [0], [0, 0, 1, 0], [], []>} : vector<8x8xf32>, vector<8x8xf32>, vector<8x8xf32> -> vector<8x8xf32>
    %cst_42 = arith.constant 0.353553385 : f32
    %69 = vector.broadcast %cst_42 : f32 to vector<8x8xf32>
    %70 = arith.mulf %68, %69 : vector<8x8xf32>
    %c0_43 = arith.constant 0 : index
    %c2 = arith.constant 2 : index
    %c0_44 = arith.constant 0 : index
    %c0_45 = arith.constant 0 : index
    %71 = vector.load %arg4[%c0_43, %c2, %c0_44, %c0_45] : memref<1x4x8x8xf32, #tpu.memory_space<vmem>>, vector<1x1x8x8xf32>
    %72 = vector.shape_cast %71 : vector<1x1x8x8xf32> to vector<8x8xf32>
    %cst_46 = arith.constant 9.99999997E-7 : f32
    %73 = vector.broadcast %cst_46 : f32 to vector<8x8xf32>
    %74 = arith.maximumf %72, %73 : vector<8x8xf32>
    %cst_47 = arith.constant dense<0xFF800000> : vector<8xf32>
    %75 = vector.multi_reduction <maximumf>, %70, %cst_47 [1] : vector<8x8xf32> to vector<8xf32>
    %76 = vector.shape_cast %75 : vector<8xf32> to vector<8x1xf32>
    %77 = vector.broadcast %76 : vector<8x1xf32> to vector<8x8xf32>
    %78 = arith.subf %70, %77 : vector<8x8xf32>
    %79 = math.exp %78 : vector<8x8xf32>
    %80 = arith.mulf %74, %79 : vector<8x8xf32>
    %cst_48 = arith.constant dense<0.000000e+00> : vector<8xf32>
    %81 = vector.multi_reduction <add>, %80, %cst_48 [1] : vector<8x8xf32> to vector<8xf32>
    %82 = vector.shape_cast %81 : vector<8xf32> to vector<8x1xf32>
    %83 = tpu.reciprocal %82 {approx = true} : vector<8x1xf32> -> vector<8x1xf32>
    %84 = vector.broadcast %83 : vector<8x1xf32> to vector<8x8xf32>
    %85 = arith.mulf %80, %84 : vector<8x8xf32>
    %cst_49 = arith.constant dense<0.000000e+00> : vector<8x8xf32>
    %86 = tpu.matmul %85, %67, %cst_49 {dimension_numbers = #tpu.dot_dimension_numbers<[1], [0], [0], [1], [0, 0, 1, 1], [], []>} : vector<8x8xf32>, vector<8x8xf32>, vector<8x8xf32> -> vector<8x8xf32>
    %87 = vector.extract_strided_slice %10 {offsets = [0, 24], sizes = [8, 8], strides = [1, 1]} : vector<8x32xf32> to vector<8x8xf32>
    %88 = vector.extract_strided_slice %15 {offsets = [0, 24], sizes = [8, 8], strides = [1, 1]} : vector<8x32xf32> to vector<8x8xf32>
    %89 = vector.extract_strided_slice %20 {offsets = [0, 24], sizes = [8, 8], strides = [1, 1]} : vector<8x32xf32> to vector<8x8xf32>
    %cst_50 = arith.constant dense<0.000000e+00> : vector<8x8xf32>
    %90 = tpu.matmul %87, %88, %cst_50 {dimension_numbers = #tpu.dot_dimension_numbers<[1], [1], [0], [0], [0, 0, 1, 0], [], []>} : vector<8x8xf32>, vector<8x8xf32>, vector<8x8xf32> -> vector<8x8xf32>
    %cst_51 = arith.constant 0.353553385 : f32
    %91 = vector.broadcast %cst_51 : f32 to vector<8x8xf32>
    %92 = arith.mulf %90, %91 : vector<8x8xf32>
    %c0_52 = arith.constant 0 : index
    %c3 = arith.constant 3 : index
    %c0_53 = arith.constant 0 : index
    %c0_54 = arith.constant 0 : index
    %93 = vector.load %arg4[%c0_52, %c3, %c0_53, %c0_54] : memref<1x4x8x8xf32, #tpu.memory_space<vmem>>, vector<1x1x8x8xf32>
    %94 = vector.shape_cast %93 : vector<1x1x8x8xf32> to vector<8x8xf32>
    %cst_55 = arith.constant 9.99999997E-7 : f32
    %95 = vector.broadcast %cst_55 : f32 to vector<8x8xf32>
    %96 = arith.maximumf %94, %95 : vector<8x8xf32>
    %cst_56 = arith.constant dense<0xFF800000> : vector<8xf32>
    %97 = vector.multi_reduction <maximumf>, %92, %cst_56 [1] : vector<8x8xf32> to vector<8xf32>
    %98 = vector.shape_cast %97 : vector<8xf32> to vector<8x1xf32>
    %99 = vector.broadcast %98 : vector<8x1xf32> to vector<8x8xf32>
    %100 = arith.subf %92, %99 : vector<8x8xf32>
    %101 = math.exp %100 : vector<8x8xf32>
    %102 = arith.mulf %96, %101 : vector<8x8xf32>
    %cst_57 = arith.constant dense<0.000000e+00> : vector<8xf32>
    %103 = vector.multi_reduction <add>, %102, %cst_57 [1] : vector<8x8xf32> to vector<8xf32>
    %104 = vector.shape_cast %103 : vector<8xf32> to vector<8x1xf32>
    %105 = tpu.reciprocal %104 {approx = true} : vector<8x1xf32> -> vector<8x1xf32>
    %106 = vector.broadcast %105 : vector<8x1xf32> to vector<8x8xf32>
    %107 = arith.mulf %102, %106 : vector<8x8xf32>
    %cst_58 = arith.constant dense<0.000000e+00> : vector<8x8xf32>
    %108 = tpu.matmul %107, %89, %cst_58 {dimension_numbers = #tpu.dot_dimension_numbers<[1], [0], [0], [1], [0, 0, 1, 1], [], []>} : vector<8x8xf32>, vector<8x8xf32>, vector<8x8xf32> -> vector<8x8xf32>
    %109 = tpu.concatenate %42, %64, %86, %108 in 1 : vector<8x8xf32>, vector<8x8xf32>, vector<8x8xf32>, vector<8x8xf32> -> vector<8x32xf32>
    %c0_59 = arith.constant 0 : index
    %c0_60 = arith.constant 0 : index
    %110 = vector.load %arg11[%c0_59, %c0_60] : memref<32x32xf32, #tpu.memory_space<vmem>>, vector<32x32xf32>
    %cst_61 = arith.constant dense<0.000000e+00> : vector<8x32xf32>
    %111 = tpu.matmul %109, %110, %cst_61 {dimension_numbers = #tpu.dot_dimension_numbers<[1], [0], [0], [1], [0, 0, 1, 1], [], []>} : vector<8x32xf32>, vector<32x32xf32>, vector<8x32xf32> -> vector<8x32xf32>
    %c0_62 = arith.constant 0 : index
    %c0_63 = arith.constant 0 : index
    %112 = vector.load %arg12[%c0_62, %c0_63] : memref<1x32xf32, #tpu.memory_space<vmem>>, vector<1x32xf32>
    %113 = vector.broadcast %112 : vector<1x32xf32> to vector<8x32xf32>
    %114 = arith.addf %111, %113 : vector<8x32xf32>
    %c0_64 = arith.constant 0 : index
    %c0_65 = arith.constant 0 : index
    %c0_66 = arith.constant 0 : index
    %115 = vector.load %arg13[%c0_64, %c0_65, %c0_66] : memref<1x8x32xf32, #tpu.memory_space<vmem>>, vector<1x8x32xf32>
    %116 = vector.shape_cast %115 : vector<1x8x32xf32> to vector<8x32xf32>
    %117 = vector.shape_cast %114 : vector<8x32xf32> to vector<1x8x32xf32>
    tpu.vector_store %arg13[%c0_64, %c0_65, %c0_66], %117 {strides = array<i32>} : memref<1x8x32xf32, #tpu.memory_space<vmem>>, vector<1x8x32xf32>,
    return
  }
  func.func @transform_0(%arg0: i32) -> (i32, i32, i32) {
    %c0_i32 = arith.constant 0 : i32
    %c0_i32_0 = arith.constant 0 : i32
    %c0_i32_1 = arith.constant 0 : i32
    return %arg0, %c0_i32, %c0_i32_0 : i32, i32, i32
  }
  func.func @transform_1(%arg0: i32) -> (i32, i32, i32) {
    %c0_i32 = arith.constant 0 : i32
    %c0_i32_0 = arith.constant 0 : i32
    %c0_i32_1 = arith.constant 0 : i32
    return %arg0, %c0_i32, %c0_i32_0 : i32, i32, i32
  }
  func.func @transform_2(%arg0: i32) -> (i32, i32, i32) {
    %c0_i32 = arith.constant 0 : i32
    %c0_i32_0 = arith.constant 0 : i32
    %c0_i32_1 = arith.constant 0 : i32
    return %arg0, %c0_i32, %c0_i32_0 : i32, i32, i32
  }
  func.func @transform_3(%arg0: i32) -> (i32, i32, i32, i32) {
    %c0_i32 = arith.constant 0 : i32
    %c0_i32_0 = arith.constant 0 : i32
    %c0_i32_1 = arith.constant 0 : i32
    %c0_i32_2 = arith.constant 0 : i32
    return %arg0, %c0_i32, %c0_i32_0, %c0_i32_1 : i32, i32, i32, i32
  }
  func.func @transform_4(%arg0: i32) -> (i32, i32) {
    %c0_i32 = arith.constant 0 : i32
    %c0_i32_0 = arith.constant 0 : i32
    %c0_i32_1 = arith.constant 0 : i32
    return %c0_i32, %c0_i32_0 : i32, i32
  }
  func.func @transform_5(%arg0: i32) -> (i32, i32) {
    %c0_i32 = arith.constant 0 : i32
    %c0_i32_0 = arith.constant 0 : i32
    %c0_i32_1 = arith.constant 0 : i32
    return %c0_i32, %c0_i32_0 : i32, i32
  }
  func.func @transform_6(%arg0: i32) -> (i32, i32) {
    %c0_i32 = arith.constant 0 : i32
    %c0_i32_0 = arith.constant 0 : i32
    %c0_i32_1 = arith.constant 0 : i32
    return %c0_i32, %c0_i32_0 : i32, i32
  }
  func.func @transform_7(%arg0: i32) -> (i32, i32) {
    %c0_i32 = arith.constant 0 : i32
    %c0_i32_0 = arith.constant 0 : i32
    %c0_i32_1 = arith.constant 0 : i32
    return %c0_i32, %c0_i32_0 : i32, i32
  }
  func.func @transform_8(%arg0: i32) -> (i32, i32) {
    %c0_i32 = arith.constant 0 : i32
    %c0_i32_0 = arith.constant 0 : i32
    %c0_i32_1 = arith.constant 0 : i32
    return %c0_i32, %c0_i32_0 : i32, i32
  }
  func.func @transform_9(%arg0: i32) -> (i32, i32) {
    %c0_i32 = arith.constant 0 : i32
    %c0_i32_0 = arith.constant 0 : i32
    %c0_i32_1 = arith.constant 0 : i32
    return %c0_i32, %c0_i32_0 : i32, i32
  }
  func.func @transform_10(%arg0: i32) -> (i32, i32) {
    %c0_i32 = arith.constant 0 : i32
    %c0_i32_0 = arith.constant 0 : i32
    %c0_i32_1 = arith.constant 0 : i32
    return %c0_i32, %c0_i32_0 : i32, i32
  }
  func.func @transform_11(%arg0: i32) -> (i32, i32) {
    %c0_i32 = arith.constant 0 : i32
    %c0_i32_0 = arith.constant 0 : i32
    %c0_i32_1 = arith.constant 0 : i32
    return %c0_i32, %c0_i32_0 : i32, i32
  }
  func.func @transform_12(%arg0: i32) -> (i32, i32, i32) {
    %c0_i32 = arith.constant 0 : i32
    %c0_i32_0 = arith.constant 0 : i32
    %c0_i32_1 = arith.constant 0 : i32
    return %arg0, %c0_i32, %c0_i32_0 : i32, i32, i32
  }
}

</mosaic_0001>

<bundles_post_ra>
// kernel: tpu_custom_call.1
= control target key start
LH: loop header
LB: loop body
LE: loop exit
PB: predicated region body
PF: predicated region fallthrough
CT: control target
= control target key end

     0   :  { %s2985_s0 = inlined_call_operand.hbm [shape: f32[2,8,32], index: 0, kind: input, shape index: {}]   ;;  %s2986_s1 = inlined_call_operand.hbm [shape: f32[2,8,32], index: 1, kind: input, shape index: {}]   ;;  %s2987_s2 = inlined_call_operand.hbm [shape: f32[2,8,32], index: 2, kind: input, shape index: {}]   ;;  %s2988_s3 = inlined_call_operand.hbm [shape: f32[2,4,8,8], index: 3, kind: input, shape index: {}]   ;;  %s2989_s4 = inlined_call_operand.hbm [shape: f32[32,32], index: 4, kind: input, shape index: {}]   ;;  %s2990_s5 = inlined_call_operand.vmem [shape: f32[1,32], index: 5, kind: input, shape index: {}]   ;;  %s2991_s6 = inlined_call_operand.hbm [shape: f32[32,32], index: 6, kind: input, shape index: {}]   ;;  %s2992_s7 = inlined_call_operand.vmem [shape: f32[1,32], index: 7, kind: input, shape index: {}]   ;;  %s2993_s8 = inlined_call_operand.hbm [shape: f32[32,32], index: 8, kind: input, shape index: {}]   ;;  %s2994_s9 = inlined_call_operand.vmem [shape: f32[1,32], index: 9, kind: input, shape index: {}]   ;;  %s2995_s10 = inlined_call_operand.vmem [shape: f32[32,32], index: 10, kind: input, shape index: {}]   ;;  %s2996_s11 = inlined_call_operand.vmem [shape: f32[1,32], index: 11, kind: input, shape index: {}]   ;;  %s2997_s12 = inlined_call_operand.hbm [shape: f32[2,8,32], index: 12, kind: output, shape index: {}]  }
   0x1   :  { %3021 = sst [smem:[#allocation27_spill]] %s2986_s1 }
   0x2   :  { %3022 = sst [smem:[#allocation28_spill]] %s2989_s4 }
   0x3   :  { %3023 = sst [smem:[#allocation29_spill]] %s2991_s6 }
   0x4   :  { %3024 = sst [smem:[#allocation30_spill]] %s2994_s9 }
   0x5   :  { %3025 = sst [smem:[#allocation31_spill]] %s2995_s10 }
   0x6   :  { %3026 = sst [smem:[#allocation32_spill]] %s2996_s11 }
   0x7   :  { %3027 = sst [smem:[#allocation33_spill]] %s2997_s12 }
   0x8   :  { %17 = vsyncpa [#allocation3], 0 }
   0x9   :  { %19 = vsyncpa [#allocation3 + $0x1], 0 }
   0xa   :  { %20 = vsyncpa [#allocation6], 0 }
   0xb   :  { %22 = vsyncpa [#allocation6 + $0x1], 0 }
   0xc   :  { %23 = vsyncpa [#allocation9], 0 }
   0xd   :  { %25 = vsyncpa [#allocation9 + $0x1], 0 }
   0xe   :  { %26 = vsyncpa [#allocation12], 0 }
   0xf   :  { %27 = vsyncpa [#allocation4], 0 }
  0x10   :  { %29 = vsyncpa [#allocation4 + $0x1], 0  ;;  %s2482_s21 = smov 0   ;;  %s2484_s22 = smov 0  }
  0x11   :  { %s2486_s23 = smov 0   ;;  %s2488_s24 = smov 0  }
  0x12 LB: > { %3028 = sst [smem:[#allocation21_spill]] %s2384_s21  ;;  %s2503_s25 = sadd.s32 4294967295, %s2396_s24   ;;  %s2396_s24 = sphi %s2488_s24, %s3070_s24   ;;  %s2392_s23 = sphi %s2486_s23, %s3072_s23   ;;  %s2388_s22 = sphi %s2484_s22, %s3074_s22   ;;  %s2384_s21 = sphi %s2482_s21, %s3073_s21  }
  0x13   : > { %3029 = sst [smem:[#allocation22_spill]] %s2392_s23  ;;  %s1795_s26 = sadd.s32 4294967294, %s2396_s24  }
  0x14   : > { %p55_p0 = scmp.ne.s32.totalorder %s2388_s22, %s2384_s21  ;;  %p2999_p1 = scmp.eq.s32.totalorder %s2503_s25, 0 }
  0x15   : > { %p331_p3 = scmp.eq.s32.totalorder %s1795_s26, 1  ;;  %p1796_p5 = scmp.ge.s32.totalorder %s2396_s24, 1 }
  0x16   : > { %p2512_p4 = por %p2999_p1, %p55_p0  ;;  %p338_p7 = scmp.lt.s32.totalorder %s2396_s24, 3 }
  0x17   : > { %p2517_p6 = por %p331_p3, %p55_p0  ;;  %s2398_s30 = smov [#allocation10]  }
  0x18   : > { %s3030_s27 = scalar_select %p2512_p4, 1, 0 }
  0x19   : > { %s3031_s28 = scalar_select %p2517_p6, 1, 0 }
  0x1a   : > { %p2522_p8 = pnand %p1796_p5, %p338_p7  ;;  %s350_s13 = sshll.u32 %s2398_s30, 4  ;;  %s2526_s13 = int_to_ptr.vmem [resolvable:$true] %s350_s13 }
  0x1b   : > { %3032 = sst [smem:[#allocation23_spill]] %s3031_s28  ;;  %s2399_s15 = smov [#allocation11]  }
  0x1c   : > { %s3033_s29 = scalar_select %p2522_p8, 1, 0 }
  0x1d   : > { %p2013_p9 = pneg %p2522_p8  ;;  %s366_s16 = sshll.u32 %s2399_s15, 4  ;;  %s2537_s16 = int_to_ptr.vmem [resolvable:$true] %s366_s16 }
  0x1e   : > { %s3035_s4 = sld [smem:[#allocation28_spill]] }
  0x1f   : > { %p2533_p11 = pnand %p2013_p9, %p2999_p1 }
  0x21   : > { %s3034_s14 = scalar_select %p2533_p11, 1, 0 }
  0x22   : > { %p2547_p13 = pneg %p2533_p11 }
  0x24   : > { %s2110_s19 = scalar_lea.hbm %s3035_s4, 512 }
  0x25   : > { %p2111_p12 = scmp.ne.s32.totalorder %s3035_s4, %s2110_s19  ;;  %p2117_p5 = scmp.lt.u32.totalorder %s2110_s19, %s3035_s4 }
  0x26   : > { %s3036_s30 = scalar_select %p2547_p13, 1, 0 }
  0x27   : > { %p2113_p0 = pnand %p2547_p13, %p2111_p12 }
  0x29   : > { %p2114_p3 = pneg %p2113_p0 }
  0x2b   : > { %p2119_p7 = pnand %p2117_p5, %p2114_p3 }
  0x2d   : > { %2122 = shalt.err (!%p2119_p7)
}
  0x2e   : > { %s2123_s17 = scalar_lea.vmem %s2526_s13, 512  ;;  %p2131_p2 = scmp.lt.s32.totalorder %s2526_s13, %s2526_s13 }
  0x2f   : > { %p2124_p9 = scmp.ne.s32.totalorder %s2526_s13, %s2123_s17  ;;  %p2132_p6 = scmp.lt.s32.totalorder %s2123_s17, %s2123_s17 }
  0x31   : > { %p2126_p10 = pnand %p2124_p9, %p2547_p13  ;;  %p2133_p12 = por %p2132_p6, %p2131_p2 }
  0x33   : > { %p2127_p1 = pneg %p2126_p10 }
  0x35   : > { %p2134_p0 = pnand %p2133_p12, %p2127_p1 }
  0x37   : > { %2137 = shalt.err (!%p2134_p0)
}
  0x38   : > { %s3003_s18 = smov 128   ;;  %s3005_s28 = smov 8  }
  0x39   : > { %2016 = dma.hbm_to_vmem [thread:$0]  (!%p2533_p11), %s3035_s4, 512, %s2526_s13, [#allocation9], %s3003_s18, %s3003_s18, %s3005_s28  }
  0x3a   : > { %s3037_s6 = sld [smem:[#allocation29_spill]] }
  0x40   : > { %s2138_s17 = scalar_lea.hbm %s3037_s6, 512 }
  0x41   : > { %p2139_p1 = scmp.ne.s32.totalorder %s3037_s6, %s2138_s17  ;;  %p2145_p10 = scmp.lt.u32.totalorder %s2138_s17, %s3037_s6 }
  0x43   : > { %p2141_p2 = pnand %p2139_p1, %p2547_p13 }
  0x45   : > { %p2142_p6 = pneg %p2141_p2 }
  0x47   : > { %p2147_p3 = pnand %p2145_p10, %p2142_p6 }
  0x49   : > { %2150 = shalt.err (!%p2147_p3)
}
  0x4a   : > { %s2151_s13 = scalar_lea.vmem %s2537_s16, 512  ;;  %p2159_p12 = scmp.lt.s32.totalorder %s2537_s16, %s2537_s16 }
  0x4b   : > { %p2152_p5 = scmp.ne.s32.totalorder %s2537_s16, %s2151_s13  ;;  %p2160_p0 = scmp.lt.s32.totalorder %s2151_s13, %s2151_s13 }
  0x4d   : > { %p2154_p7 = pnand %p2152_p5, %p2547_p13  ;;  %p2161_p1 = por %p2160_p0, %p2159_p12 }
  0x4f   : > { %p2155_p9 = pneg %p2154_p7 }
  0x51   : > { %p2162_p2 = pnand %p2161_p1, %p2155_p9 }
  0x53   : > { %2165 = shalt.err (!%p2162_p2)
}
  0x54   : > { %2019 = dma.hbm_to_vmem [thread:$0]  (!%p2533_p11), %s3037_s6, 512, %s2537_s16, [#allocation12], %s3003_s18, %s3003_s18, %s3005_s28  }
  0x55   : > { %s2598_s12 = sadd.s32 1, %s2396_s24   ;;  %s42_s21 = sadd.s32 1, %s2392_s23 }
  0x56   : > { %3038 = sst [smem:[#allocation24_spill]] %s2598_s12  ;;  %s39_s19 = ssub.s32 %s2396_s24, %s2598_s12 }
  0x57   : > { %p49_p6 = scmp.ne.s32.totalorder %s2392_s23, %s2388_s22  ;;  %p40_p10 = scmp.eq.s32.totalorder %s39_s19, 0 }
  0x58   : > { %p50_p3 = scmp.eq.s32.totalorder %s2396_s24, 0  ;;  %p3039_p5 = scmp.eq.s32.totalorder %s2503_s25, 1 }
  0x59   : > { %p2043_p9 = scmp.lt.s32.totalorder %s2396_s24, 2  ;;  %s2617_s15 = sand.u32 1, %s2392_s23  }
  0x5a   : > { %p2608_p7 = por %p3039_p5, %p49_p6  ;;  %p51_p12 = por %p50_p3, %p49_p6 }
  0x5b   : > { %s2614_s26 = scalar_select %p40_p10, %s2392_s23, %s42_s21  }
  0x5c   : > { %s3040_s20 = scalar_select %p2608_p7, 1, 0 }
  0x5d   : > { %3042 = sst [smem:[#allocation26_spill]] %s2614_s26  ;;  %s2620_s16 = sshll.u32 %s2617_s15, 3 }
  0x5e   : > { %3041 = sst [smem:[#allocation25_spill]] %s3040_s20  ;;  %s2623_s17 = sshll.u32 %s2396_s24, 7 }
  0x5f   : > { %p2625_p0 = pnand %p2043_p9, %p51_p12  ;;  %s3012_s10 = sand.u32 1, %s2396_s24  }
  0x60   : > { %s3044_s1 = sld [smem:[#allocation27_spill]]  ;;  %s427_s18 = scalar_lea.vmem [#allocation5], %s2620_s16 }
  0x61   : > { %s3043_s13 = scalar_select %p2625_p0, 1, 0 }
  0x62   : > { %s434_s28 = sshll.u32 %s427_s18, 4  ;;  %s2642_s6 = scalar_lea.sflag [#allocation6], %s3012_s10  ;;  %s2637_s28 = int_to_ptr.vmem [resolvable:$true] %s434_s28 }
  0x63   : > { %p2648_p2 = pneg %p2625_p0 }
  0x66   : > { %s2634_s19 = scalar_lea.hbm %s3044_s1, %s2623_s17  ;;  %s2171_s18 = scalar_lea.hbm %s3044_s1, 256 }
  0x67   : > { %s2166_s26 = scalar_lea.hbm %s2634_s19, 128  ;;  %p2172_p3 = scmp.lt.u32.totalorder %s2634_s19, %s3044_s1 }
  0x68   : > { %p2167_p1 = scmp.ne.s32.totalorder %s2634_s19, %s2166_s26  ;;  %p2173_p5 = scmp.lt.u32.totalorder %s2171_s18, %s2166_s26 }
  0x69   : > { %p2175_p12 = scmp.lt.u32.totalorder %s2166_s26, %s2634_s19 }
  0x6a   : > { %p2169_p6 = pnand %p2648_p2, %p2167_p1  ;;  %p2174_p9 = por %p2173_p5, %p2172_p3 }
  0x6c   : > { %p2170_p10 = pneg %p2169_p6  ;;  %p2176_p7 = por %p2175_p12, %p2174_p9 }
  0x6e   : > { %p2177_p4 = pnand %p2176_p7, %p2170_p10 }
  0x70   : > { %2180 = shalt.err (!%p2177_p4)
}
  0x71   : > { %s2181_s10 = scalar_lea.vmem %s2637_s28, 128  ;;  %s2402_s11 = smov [#allocation5]  }
  0x72   : > { %p2182_p1 = scmp.ne.s32.totalorder %s2637_s28, %s2181_s10  ;;  %s2186_s21 = sshll.u32 %s2402_s11, 4  ;;  %s2187_s21 = int_to_ptr.vmem [resolvable:$false] %s2186_s21 }
  0x73   : > { %s2188_s4 = scalar_lea.vmem %s2187_s21, 256  ;;  %p2189_p11 = scmp.lt.s32.totalorder %s2637_s28, %s2187_s21 }
  0x74   : > { %p2184_p6 = pnand %p2182_p1, %p2648_p2  ;;  %p2190_p13 = scmp.lt.s32.totalorder %s2188_s4, %s2181_s10 }
  0x76   : > { %p2185_p8 = pneg %p2184_p6  ;;  %p2191_p3 = por %p2190_p13, %p2189_p11 }
  0x78   : > { %p2192_p5 = pnand %p2191_p3, %p2185_p8 }
  0x7a   : > { %2195 = shalt.err (!%p2192_p5)
}
  0x7b   : > { %2029 = dma.hbm_to_vmem [thread:$0]  (!%p2625_p0), %s2634_s19, 128, %s2637_s28, %s2642_s6  }
  0x7c   : > { %s3046_s12 = sshll.u32 %s2617_s15, 5  ;;  %s2403_s1 = smov [#allocation13]  }
  0x7d   : > { %s463_s26 = scalar_lea.vmem [#allocation8], %s3046_s12  ;;  %s382_s11 = sshll.u32 %s2403_s1, 4  ;;  %s383_s11 = int_to_ptr.vmem [resolvable:$true] %s382_s11 }
  0x7e   : > { %s470_s18 = sshll.u32 %s463_s26, 4  ;;  %s2196_s4 = scalar_lea.hbm %s2993_s8, 512  ;;  %s2674_s18 = int_to_ptr.vmem [resolvable:$true] %s470_s18 }
  0x7f   : > { %p2197_p4 = scmp.ne.s32.totalorder %s2993_s8, %s2196_s4  ;;  %p3047_p8 = scmp.ne.s32.totalorder %s3036_s30, 0 }
  0x80   : > { %p2203_p7 = scmp.lt.u32.totalorder %s2196_s4, %s2993_s8 }
  0x81   : > { %p2199_p11 = pnand %p2197_p4, %p3047_p8 }
  0x83   : > { %p2200_p13 = pneg %p2199_p11 }
  0x85   : > { %p2205_p10 = pnand %p2203_p7, %p2200_p13 }
  0x87   : > { %2208 = shalt.err (!%p2205_p10)
}
  0x88   : > { %s2209_s1 = scalar_lea.vmem %s383_s11, 512  ;;  %p2217_p6 = scmp.lt.s32.totalorder %s383_s11, %s383_s11 }
  0x89   : > { %p2210_p9 = scmp.ne.s32.totalorder %s383_s11, %s2209_s1  ;;  %p2218_p3 = scmp.lt.s32.totalorder %s2209_s1, %s2209_s1 }
  0x8b   : > { %p2212_p12 = pnand %p2210_p9, %p3047_p8  ;;  %p2219_p5 = por %p2218_p3, %p2217_p6 }
  0x8d   : > { %p2213_p1 = pneg %p2212_p12 }
  0x8f   : > { %p2220_p0 = pnand %p2219_p5, %p2213_p1 }
  0x91   : > { %2223 = shalt.err (!%p2220_p0)
}
  0x92   : > { %p3048_p4 = scmp.ne.s32.totalorder %s3034_s14, 0  ;;  %s3049_s9 = smov 8  }
  0x93   : > { %s3050_s20 = smov 128   ;;  %s2701_s21 = scalar_lea.hbm %s2985_s0, %s2623_s17 }
  0x94   : > { %2022 = dma.hbm_to_vmem [thread:$0]  (!%p3048_p4), %s2993_s8, 512, %s383_s11, [#allocation12], %s3050_s20, %s3050_s20, %s3049_s9  }
  0x95   : > { %s409_s14 = scalar_lea.vmem [#allocation2], %s2620_s16  ;;  %s406_s28 = scalar_lea.sflag [#allocation3], %s2617_s15 }
  0x96   : > { %s416_s4 = sshll.u32 %s409_s14, 4  ;;  %s2224_s19 = scalar_lea.hbm %s2701_s21, 128  ;;  %s417_s4 = int_to_ptr.vmem [resolvable:$true] %s416_s4 }
  0x97   : > { %p2225_p0 = scmp.ne.s32.totalorder %s2701_s21, %s2224_s19  ;;  %s2229_s12 = scalar_lea.hbm %s2985_s0, 256 }
  0x98   : > { %p2230_p13 = scmp.lt.u32.totalorder %s2701_s21, %s2985_s0  ;;  %p2231_p7 = scmp.lt.u32.totalorder %s2229_s12, %s2224_s19 }
  0x99   : > { %p2227_p8 = pnand %p2225_p0, %p2648_p2  ;;  %p2233_p9 = scmp.lt.u32.totalorder %s2224_s19, %s2701_s21 }
  0x9a   : > { %p2232_p10 = por %p2231_p7, %p2230_p13 }
  0x9b   : > { %p2228_p11 = pneg %p2227_p8 }
  0x9c   : > { %p2234_p12 = por %p2233_p9, %p2232_p10 }
  0x9e   : > { %p2235_p1 = pnand %p2234_p12, %p2228_p11 }
  0xa0   : > { %2238 = shalt.err (!%p2235_p1)
}
  0xa1   : > { %s2239_s15 = scalar_lea.vmem %s417_s4, 128  ;;  %s2404_s10 = smov [#allocation2]  }
  0xa2   : > { %p2240_p6 = scmp.ne.s32.totalorder %s417_s4, %s2239_s15  ;;  %s2244_s14 = sshll.u32 %s2404_s10, 4  ;;  %s2245_s14 = int_to_ptr.vmem [resolvable:$false] %s2244_s14 }
  0xa3   : > { %s2246_s1 = scalar_lea.vmem %s2245_s14, 256  ;;  %p2247_p4 = scmp.lt.s32.totalorder %s417_s4, %s2245_s14 }
  0xa4   : > { %p2242_p3 = pnand %p2240_p6, %p2648_p2  ;;  %p2248_p0 = scmp.lt.s32.totalorder %s2246_s1, %s2239_s15 }
  0xa6   : > { %p2243_p5 = pneg %p2242_p3  ;;  %p2249_p8 = por %p2248_p0, %p2247_p4 }
  0xa8   : > { %p2250_p7 = pnand %p2249_p8, %p2243_p5 }
  0xaa   : > { %2253 = shalt.err (!%p2250_p7)
}
  0xab   : > { %p3051_p13 = scmp.ne.s32.totalorder %s3043_s13, 0  ;;  %s2726_s12 = scalar_lea.hbm %s2987_s2, %s2623_s17 }
  0xac   : > { %s445_s26 = scalar_lea.vmem [#allocation7], %s2620_s16  ;;  %s1846_s15 = sshll.u32 %s2396_s24, 9 }
  0xad   : > { %2026 = dma.hbm_to_vmem [thread:$0]  (!%p3051_p13), %s2701_s21, 128, %s417_s4, %s406_s28  }
  0xae   : > { %s452_s30 = sshll.u32 %s445_s26, 4  ;;  %s2254_s10 = scalar_lea.hbm %s2726_s12, 128  ;;  %s453_s30 = int_to_ptr.vmem [resolvable:$true] %s452_s30 }
  0xaf   : > { %p2255_p11 = scmp.ne.s32.totalorder %s2726_s12, %s2254_s10  ;;  %s2259_s4 = scalar_lea.hbm %s2987_s2, 256 }
  0xb0   : > { %p2260_p12 = scmp.lt.u32.totalorder %s2726_s12, %s2987_s2  ;;  %p2261_p1 = scmp.lt.u32.totalorder %s2259_s4, %s2254_s10 }
  0xb1   : > { %p2257_p10 = pnand %p2255_p11, %p2648_p2  ;;  %p2263_p3 = scmp.lt.u32.totalorder %s2254_s10, %s2726_s12 }
  0xb2   : > { %p2262_p6 = por %p2261_p1, %p2260_p12 }
  0xb3   : > { %p2258_p9 = pneg %p2257_p10 }
  0xb4   : > { %p2264_p5 = por %p2263_p3, %p2262_p6 }
  0xb6   : > { %p2265_p4 = pnand %p2264_p5, %p2258_p9 }
  0xb8   : > { %2268 = shalt.err (!%p2265_p4)
}
  0xb9   : > { %s2269_s16 = scalar_lea.vmem %s453_s30, 128  ;;  %s2405_s1 = smov [#allocation7]  }
  0xba   : > { %p2270_p0 = scmp.ne.s32.totalorder %s453_s30, %s2269_s16  ;;  %s2274_s19 = sshll.u32 %s2405_s1, 4  ;;  %s2275_s19 = int_to_ptr.vmem [resolvable:$false] %s2274_s19 }
  0xbb   : > { %s2276_s11 = scalar_lea.vmem %s2275_s19, 256  ;;  %p2277_p11 = scmp.lt.s32.totalorder %s453_s30, %s2275_s19 }
  0xbc   : > { %p2272_p8 = pnand %p2270_p0, %p2648_p2  ;;  %p2278_p10 = scmp.lt.s32.totalorder %s2276_s11, %s2269_s16 }
  0xbe   : > { %p2273_p7 = pneg %p2272_p8  ;;  %p2279_p13 = por %p2278_p10, %p2277_p11 }
  0xc0   : > { %p2280_p1 = pnand %p2279_p13, %p2273_p7 }
  0xc2   : > { %2283 = shalt.err (!%p2280_p1)
}
  0xc3   : > { %p3052_p12 = scmp.ne.s32.totalorder %s3043_s13, 0  ;;  %s2751_s14 = scalar_lea.hbm %s2988_s3, %s1846_s15 }
  0xc4   : > { %s3053_s21 = sand.u32 1, %s2396_s24   ;;  %s2284_s28 = scalar_lea.hbm %s2751_s14, 512 }
  0xc5   : > { %2032 = dma.hbm_to_vmem [thread:$0]  (!%p3052_p12), %s2726_s12, 128, %s453_s30, %s2642_s6  }
  0xc6   : > { %s2755_s4 = scalar_lea.sflag [#allocation9], %s3053_s21  ;;  %p2285_p13 = scmp.ne.s32.totalorder %s2751_s14, %s2284_s28 }
  0xc7   : > { %s2289_s6 = scalar_lea.hbm %s2988_s3, 1024  ;;  %p2290_p3 = scmp.lt.u32.totalorder %s2751_s14, %s2988_s3 }
  0xc8   : > { %p2287_p9 = pnand %p2285_p13, %p2648_p2  ;;  %p2291_p5 = scmp.lt.u32.totalorder %s2289_s6, %s2284_s28 }
  0xc9   : > { %p2293_p0 = scmp.lt.u32.totalorder %s2284_s28, %s2751_s14 }
  0xca   : > { %p2288_p6 = pneg %p2287_p9  ;;  %p2292_p4 = por %p2291_p5, %p2290_p3 }
  0xcc   : > { %p2294_p8 = por %p2293_p0, %p2292_p4 }
  0xce   : > { %p2295_p7 = pnand %p2294_p8, %p2288_p6 }
  0xd0   : > { %2298 = shalt.err (!%p2295_p7)
}
  0xd1   : > { %s2299_s15 = scalar_lea.vmem %s2674_s18, 512  ;;  %s2406_s1 = smov [#allocation8]  }
  0xd2   : > { %p2300_p11 = scmp.ne.s32.totalorder %s2674_s18, %s2299_s15  ;;  %s2304_s19 = sshll.u32 %s2406_s1, 4  ;;  %s2305_s19 = int_to_ptr.vmem [resolvable:$false] %s2304_s19 }
  0xd3   : > { %s2306_s11 = scalar_lea.vmem %s2305_s19, 1024  ;;  %p2307_p13 = scmp.lt.s32.totalorder %s2674_s18, %s2305_s19 }
  0xd4   : > { %p2302_p10 = pnand %p2300_p11, %p2648_p2  ;;  %p2308_p9 = scmp.lt.s32.totalorder %s2306_s11, %s2299_s15 }
  0xd6   : > { %p2303_p1 = pneg %p2302_p10  ;;  %p2309_p3 = por %p2308_p9, %p2307_p13 }
  0xd8   : > { %p2310_p5 = pnand %p2309_p3, %p2303_p1 }
  0xda   : > { %2313 = shalt.err (!%p2310_p5)
}
  0xdb   : > { %2035 = dma.hbm_to_vmem [thread:$0]  (!%p3052_p12), %s2751_s14, 512, %s2674_s18, %s2755_s4, %s3050_s20, %s3050_s20, %s3049_s9  }
  0xdc   : > { %p3054_p2 = scmp.ne.s32.totalorder %s3033_s29, 0 }
  0xdd   : > { %s2785_s23 = sand.u32 (!%p3054_p2), 1, %s2388_s22   ;;  %p3055_p6 = scmp.ne.s32.totalorder (!%p3054_p2), %s3030_s27, 0 }
  0xde   : > { %482 = sbr.rel (%p3054_p2) target bundleno = 2155 (0x86b), region = 68  ;;  %s2788_s26 = sshll.u32 (!%p3054_p2), %s2785_s23, 3 }
  0xdf   : > { %s485_s13 = scalar_lea.sflag (!%p3054_p2), [#allocation3], %s2785_s23  ;;  %s488_s10 = scalar_lea.vmem (!%p3054_p2), [#allocation2], %s2788_s26 }
  0xe5   : > { %2359 = dma.done.wait (%p3055_p6), %s485_s13, 128  }
  0xe6   : > { %2361 = vsyncadd (%p3055_p6), %s485_s13, 4294967168  ;;  %s493_s29 = sand.u32 1, %s2503_s25   ;;  %s497_s9 = scalar_lea.vmem [#allocation5], %s2788_s26 }
  0xe7   : > { %s494_s18 = scalar_lea.sflag [#allocation6], %s493_s29 }
  0xe8   : > { %2363 = dma.done.wait (%p3055_p6), %s494_s18, 256  }
  0xe9   : > { %2365 = vsyncadd (%p3055_p6), %s494_s18, 4294967040  ;;  %s1814_s20 = sshll.u32 %s2785_s23, 5  ;;  %s506_s14 = scalar_lea.vmem [#allocation7], %s2788_s26 }
  0xea   : > { %s512_s21 = scalar_lea.sflag [#allocation9], %s493_s29  ;;  %s2804_s4 = scalar_lea.vmem [#allocation8], %s1814_s20 }
  0xeb   : > { %2367 = dma.done.wait (%p3055_p6), %s512_s21, 512  }
  0xec   : > { %2369 = vsyncadd (%p3055_p6), %s512_s21, 4294966784  ;;  %p3056_p12 = scmp.eq.s32.totalorder %s2503_s25, 0 }
  0xee   : > { %2371 = dma.done.wait (%p3056_p12), [#allocation9], 512   ;;  %p3057_p4 = pmov %p3056_p12 }
  0xf0   : > { %2373 = vsyncadd (%p3057_p4), [#allocation9], 4294966784  ;;  %p3058_p0 = pmov %p3057_p4 }
  0xf2   : > { %2375 = dma.done.wait (%p3058_p0), [#allocation12], 1024   ;;  %p3059_p8 = pmov %p3058_p0 }
  0xf3   : > { %v2407_v0 = vmov 0.0|0.0   ;;  %vm2408_vm0 = vmmov 0   ;;  %v2409_v1 = vmov 0.0   ;;  %v671_v2 = vld [vmem:[#allocation11] sm:$0xff]  ;;  %v672_v3 = vld [vmem:[#allocation11 + $0x8] sm:$0xff]  ;;  %v673_v7 = vld [vmem:[#allocation11 + $0x10] sm:$0xff] }
  0xf4   : > { %2377 = vsyncadd (%p3059_p8), [#allocation12], 4294966272  ;;  %1973 = vmatprep.subr.bf16.mxu1 %v2407_v0  ;;  %1967 = vmatprep.subr.bf16.mxu0 %v2407_v0  ;;  %v586_v4 = vld [vmem:[#allocation10] sm:$0xff]  ;;  %v1974_v5 = vpack.c.bf16 %v672_v3, %v671_v2  ;;  %v587_v6 = vld [vmem:[#allocation10 + $0x8] sm:$0xff]  ;;  %vm597_vm1 = vcmask 261120   ;;  %vm839_vm2 = vcmask 64512  }
  0xf5   : > { %1902 = vmatprep.mubr.msk.f32.mxu1 %vm2408_vm0, %v2409_v1  ;;  %1891 = vmatprep.mubr.msk.f32.mxu0 %vm2408_vm0, %v2409_v1  ;;  %v674_v8 = vld [vmem:[#allocation11 + $0x18] sm:$0xff]  ;;  %v1968_v9 = vpack.c.bf16 %v587_v6, %v586_v4  ;;  %v588_v10 = vld [vmem:[#allocation10 + $0x10] sm:$0xff]  ;;  %v584_v14 = vld [vmem:[%s497_s9] sm:$0xff]  ;;  %s2410_s6 = smov 120   ;;  %s2411_s12 = smov 112   ;;  %vm1528_vm3 = vcmask 130048  }
  0xf6   : > { %v589_v11 = vld [vmem:[#allocation10 + $0x18] sm:$0xff]  ;;  %1975 = vmatpush3.bf16.msra.mxu1 %v1974_v5  ;;  %v1977_v12 = vpack.c.bf16 %v674_v8, %v673_v7  ;;  %v1821_v16 = vld [vmem:[%s2992_s7] ss:$0 sm:$0xff]  ;;  %s2412_s30 = smov 104   ;;  %v755_v24 = vld [vmem:[#allocation13] sm:$0xff]  ;;  %s3060_s19 = sld [smem:[#allocation30_spill]] }
  0xf7   : > { %1969 = vmatpush3.bf16.msra.mxu0 %v1968_v9  ;;  %1976 = vmatprep.subr.bf16.mxu1 %v2407_v0  ;;  %v1971_v13 = vpack.c.bf16 %v589_v11, %v588_v10  ;;  %v583_v15 = vld [vmem:[%s488_s10] sm:$0xff]  ;;  %v756_v25 = vld [vmem:[#allocation13 + $0x8] sm:$0xff]  ;;  %v917_v38 = vld [vmem:[%s2804_s4] sm:$0xff]  ;;  %s3061_s10 = sld [smem:[#allocation31_spill]]  ;;  %s2414_s27 = smov 16   ;;  %vm1530_vm4 = vcmask 195584  }
  0xf8   : > { %1970 = vmatprep.subr.bf16.mxu0 %v2407_v0  ;;  %v1819_v17 = vld [vmem:[%s2990_s5] ss:$0 sm:$0xff]  ;;  %v1980_v27 = vpack.c.bf16 %v756_v25, %v755_v24  ;;  %v758_v28 = vld [vmem:[#allocation13 + $0x18] sm:$0xff]  ;;  %v918_v39 = vmax.f32 %v917_v38, 1e-06  ;;  %s2415_s28 = smov 24  }
  0xf9   : > { %v757_v26 = vld [vmem:[#allocation13 + $0x10] sm:$0xff]  ;;  %s3062_s17 = sld [smem:[#allocation25_spill]]  ;;  %s582_s15 = scalar_lea.vmem [#allocation14], %s2788_s26 }
  0xfa   : > { %1978 = vmatpush3.bf16.msra.mxu1 %v1977_v12  ;;  %v1983_v29 = vpack.c.bf16 %v758_v28, %v757_v26  ;;  %v585_v30 = vld [vmem:[%s506_s14] sm:$0xff]  ;;  %s1631_s1 = sshll.u32 %s582_s15, 4  ;;  %s3064_s13 = sld [smem:[#allocation33_spill]]  ;;  %s2942_s1 = int_to_ptr.vmem [resolvable:$true] %s1631_s1 }
  0xfb   : > { %1972 = vmatpush3.bf16.msra.mxu0 %v1971_v13  ;;  %1916 = vmatprep.subr.mxu1 %v2409_v1  ;;  %v1834_v11 = vld [vmem:[%s2804_s4 + $0x10] sm:$0xff]  ;;  %s1618_s18 = scalar_lea.sflag [#allocation4], %s2785_s23  ;;  %s2314_s9 = scalar_lea.vmem %s2942_s1, 128 }
  0xfc   : > { %1979 = vmatprep.subr.bf16.mxu0 %v2407_v0  ;;  %v1823_v43 = vld [vmem:[%s3060_s19] ss:$0 sm:$0xff]  ;;  %v1256_v13 = vmax.f32 %v1834_v11, 1e-06  ;;  %p2315_p7 = scmp.ne.s32.totalorder %s2942_s1, %s2314_s9 }
  0xfd   : > { %1903 = vmatmul.mubr.msk.f32.vlgmr.msra.gmra.mrb[0].mxu1 %vm597_vm1, %v584_v14 }
  0xfe   : > { %1892 = vmatmul.mubr.msk.f32.vlgmr.msra.gmra.mrb[0].mxu0 %vm597_vm1, %v583_v15  ;;  %1918 = vmatprep.mubr.msk.f32.mxu1 %vm2408_vm0, %v2409_v1 }
  0xff   : > { %1913 = vmatprep.mubr.msk.f32.mxu0 %vm2408_vm0, %v2409_v1  ;;  %1981 = vmatpush3.bf16.msra.mxu0 %v1980_v27  ;;  %v1830_v27 = vld [vmem:[%s2804_s4 + $0x8] sm:$0xff]  ;;  %p3065_p11 = scmp.ne.s32.totalorder %s3062_s17, 0 }
 0x100   : > { %1982 = vmatprep.subr.bf16.mxu0 %v2407_v0  ;;  %v1085_v28 = vmax.f32 %v1830_v27, 1e-06 }
 0x101   : > { %p2316_p10 = pnand %p2315_p7, %p3065_p11 }
 0x103   : > { %1984 = vmatpush3.bf16.msra.mxu0 %v1983_v29  ;;  %p2317_p1 = pneg %p2316_p10 }
 0x104   : > { %1936 = vmatprep.subr.mxu0 %v2409_v1 }
 0x106   : > { %1914 = vmatmul.mubr.msk.f32.vlgmr.msra.gmra.mrb[2].mxu0 %vm597_vm1, %v585_v30 }
 0x107   : > { %1938 = vmatprep.mubr.msk.f32.mxu0 %vm2408_vm0, %v2409_v1 }
 0x1d0   : > { %v751_v18 = vpop.f32.mrb[0].mxu1 }
 0x1d1   : > { %v752_v19 = vadd.f32 %v1821_v16, %v751_v18  ;;  %v1904_v20 = vpop.f32.mrb[1].mxu1  ;;  %v667_v21 = vpop.f32.mrb[0].mxu0 }
 0x1d2   : > { %v668_v22 = vadd.f32 %v1819_v17, %v667_v21  ;;  %v1893_v23 = vpop.f32.mrb[1].mxu0  ;;  %v1838_v20 = vld [vmem:[%s2804_s4 + $0x18] sm:$0xff]  ;;  %s2413_s4 = smov 8  }
 0x1d3   : > { %1006 = vrot.lane.b32.xlu1 %v752_v19, %s2410_s6  ;;  %1917 = vmatpush3.xpose.msk.msra.mxu1 %vm839_vm2, %v752_v19  ;;  %v1426_v21 = vmax.f32 %v1838_v20, 1e-06 }
 0x1d4   : > { %1921 = vmatprep.subr.mxu1 %v2409_v1 }
 0x1d6   : > { %1919 = vmatmul.mubr.msk.f32.vlgmr.msra.gmra.mrb[2].mxu1 %vm839_vm2, %v668_v22 }
 0x1d7   : > { %1004 = vrot.lane.b32.xlu1 %v668_v22, %s2410_s6  ;;  %1923 = vmatprep.mubr.msk.f32.mxu1 %vm2408_vm0, %v2409_v1 }
 0x1d9   : > { %v835_v44 = vpop.f32.mrb[2].mxu0 }
 0x1da   : > { %v2867_v45 = vadd.f32 %v1823_v43, %v835_v44  ;;  %v1915_v46 = vpop.f32.mrb[3].mxu0  ;;  %v1532_v44 = vld [vmem:[%s3061_s10] sm:$0xff] }
 0x1db   : > { %1175 = vrot.lane.b32.xlu1 %v668_v22, %s2411_s12 }
 0x1dc   : > { %1922 = vmatpush3.msra.mxu1 %v2867_v45 }
 0x1dd   : > { %1926 = vmatprep.subr.mxu1 %v2409_v1 }
 0x1df   : > { %1347 = vrot.lane.b32.xlu1 %v752_v19, %s2412_s30 }
 0x1e3   : > { %1345 = vrot.lane.b32.xlu1 %v668_v22, %s2412_s30 }
 0x245   : > { %v1007_v47 = vpop.permute.xlu1 %1006 }
 0x249   : > { %v1005_v48 = vpop.permute.xlu1 %1004 }
 0x24d   : > { %v1176_v49 = vpop.permute.xlu1 %1175 }
 0x251   : > { %v1348_v52 = vpop.permute.xlu1 %1347 }
 0x255   : > { %v1346_v54 = vpop.permute.xlu1 %1345 }
 0x2a9   : > { %v912_v31 = vpop.f32.mrb[2].mxu1 }
 0x2aa   : > { %v916_v32 = vmul.f32 0.35355338, %v912_v31  ;;  %v1920_v33 = vpop.f32.mrb[3].mxu1 }
 0x2ac   : > { %v919_v34 = vsel %vm839_vm2, %v916_v32, -inf }
 0x2ad   : > { %920 = vmax.xlane.f32.xlu0 %v919_v34 }
 0x33a   : > { %v921_v35 = vpop.xlane.xlu0 %920 }
 0x33b   : > { %v922_v36 = vsub.f32 %v916_v32, %v921_v35 }
 0x33d   : > { %v923_v37 = vmul.f32 1.442695, %v922_v36 }
 0x33f   : > { %2094 = vpow2.f32 %v923_v37 }
 0x349   : > { %v2095_v40 = vpop.eup %2094 }
 0x34a   : > { %v925_v41 = vmul.f32 %v2095_v40, %v918_v39 }
 0x34c   : > { %v926_v42 = vsel %vm839_vm2, %v925_v41, 0.0 }
 0x34d   : > { %927 = vadd.xlane.f32.xlu0 %v926_v42 }
 0x363   : > { %1177 = vrot.lane.b32.xlu0 %v752_v19, %s2411_s12 }
 0x3da   : > { %v928_v50 = vpop.xlane.xlu0 %927 }
 0x3db   : > { %2096 = vrcp.f32 %v928_v50 }
 0x3de   : > { %v1178_v51 = vpop.permute.xlu0 %1177 }
 0x3df   : > { %1937 = vmatpush3.xpose.msk.msra.mxu0 %vm839_vm2, %v1178_v51 }
 0x3e0   : > { %1946 = vmatprep.subr.mxu0 %v2409_v1 }
 0x3e2   : > { %1939 = vmatmul.mubr.msk.f32.vlgmr.msra.gmra.mrb[4].mxu0 %vm839_vm2, %v1176_v49 }
 0x3e3   : > { %1947 = vmatpush3.xpose.msk.msra.mxu0 %vm839_vm2, %v1348_v52  ;;  %1948 = vmatprep.mubr.msk.f32.mxu0 %vm2408_vm0, %v2409_v1 }
 0x3e4   : > { %1985 = vmatprep.subr.bf16.mxu0 %v2407_v0 }
 0x3e5   : > { %v2097_v53 = vpop.eup %2096 }
 0x3e6   : > { %v930_v55 = vmul.f32 %v2097_v53, %v925_v41  ;;  %1949 = vmatmul.mubr.msk.f32.vlgmr.msra.gmra.mrb[6].mxu0 %vm839_vm2, %v1346_v54 }
 0x3e7   : > { %1964 = vmatprep.mubr.msk.f32.mxu0 %vm2408_vm0, %v2409_v1 }
 0x3e8   : > { %1924 = vmatmul.mubr.msk.f32.vlgmr.msra.gmra.mrb[4].mxu1 %vm839_vm2, %v930_v55 }
 0x3e9   : > { %1927 = vmatpush3.xpose.msk.msra.mxu1 %vm839_vm2, %v1007_v47  ;;  %1928 = vmatprep.mubr.msk.f32.mxu1 %vm2408_vm0, %v2409_v1  ;;  %v1534_v47 = vld [vmem:[%s3061_s10 + $0x10] sm:$0xff] }
 0x3ea   : > { %1931 = vmatprep.subr.mxu1 %v2409_v1 }
 0x3ec   : > { %1929 = vmatmul.mubr.msk.f32.vlgmr.msra.gmra.mrb[6].mxu1 %vm839_vm2, %v1005_v48 }
 0x3ed   : > { %1933 = vmatprep.mubr.msk.f32.mxu1 %vm2408_vm0, %v2409_v1 }
 0x4b5   : > { %v1249_v56 = vpop.f32.mrb[4].mxu0 }
 0x4b6   : > { %v1253_v57 = vmul.f32 0.35355338, %v1249_v56  ;;  %v1940_v58 = vpop.f32.mrb[5].mxu0 }
 0x4b8   : > { %v1257_v59 = vsel %vm839_vm2, %v1253_v57, -inf }
 0x4b9   : > { %1258 = vmax.xlane.f32.xlu0 %v1257_v59  ;;  %v1419_v60 = vpop.f32.mrb[6].mxu0 }
 0x4ba   : > { %v1950_v61 = vpop.f32.mrb[7].mxu0  ;;  %v1423_v5 = vmul.f32 0.35355338, %v1419_v60 }
 0x4bb   : > { %v2891_v62 = vpop.f32.mrb[4].mxu1 }
 0x4bc   : > { %v1925_v63 = vpop.f32.mrb[5].mxu1  ;;  %v1427_v7 = vsel %vm839_vm2, %v1423_v5, -inf }
 0x4bf   : > { %v1078_v2 = vpop.f32.mrb[6].mxu1 }
 0x4c0   : > { %v1082_v3 = vmul.f32 0.35355338, %v1078_v2  ;;  %v1930_v4 = vpop.f32.mrb[7].mxu1 }
 0x4c2   : > { %v1086_v6 = vsel %vm839_vm2, %v1082_v3, -inf }
 0x4c3   : > { %1087 = vmax.xlane.f32.xlu1 %v1086_v6 }
 0x4c7   : > { %1428 = vmax.xlane.f32.xlu1 %v1427_v7 }
 0x546   : > { %v1259_v8 = vpop.xlane.xlu0 %1258 }
 0x547   : > { %v1260_v9 = vsub.f32 %v1253_v57, %v1259_v8 }
 0x549   : > { %v1261_v10 = vmul.f32 1.442695, %v1260_v9 }
 0x54b   : > { %2098 = vpow2.f32 %v1261_v10 }
 0x550   : > { %v1088_v12 = vpop.xlane.xlu1 %1087 }
 0x551   : > { %v1089_v25 = vsub.f32 %v1082_v3, %v1088_v12 }
 0x553   : > { %v1090_v26 = vmul.f32 1.442695, %v1089_v25 }
 0x554   : > { %v1429_v14 = vpop.xlane.xlu1 %1428 }
 0x555   : > { %v2099_v15 = vpop.eup %2098  ;;  %v1430_v16 = vsub.f32 %v1423_v5, %v1429_v14 }
 0x556   : > { %v1263_v17 = vmul.f32 %v2099_v15, %v1256_v13 }
 0x557   : > { %v1431_v18 = vmul.f32 1.442695, %v1430_v16 }
 0x558   : > { %v1264_v19 = vsel %vm839_vm2, %v1263_v17, 0.0 }
 0x559   : > { %2100 = vpow2.f32 %v1431_v18  ;;  %1265 = vadd.xlane.f32.xlu0 %v1264_v19 }
 0x55a   : > { %2102 = vpow2.f32 %v1090_v26 }
 0x563   : > { %v2101_v22 = vpop.eup %2100 }
 0x564   : > { %v1433_v23 = vmul.f32 %v2101_v22, %v1426_v21  ;;  %v2103_v29 = vpop.eup %2102 }
 0x565   : > { %v1092_v30 = vmul.f32 %v2103_v29, %v1085_v28 }
 0x566   : > { %v1434_v24 = vsel %vm839_vm2, %v1433_v23, 0.0 }
 0x567   : > { %1435 = vadd.xlane.f32.xlu1 %v1434_v24  ;;  %v1093_v31 = vsel %vm839_vm2, %v1092_v30, 0.0 }
 0x56f   : > { %1099 = vrot.lane.b32.xlu0 %v2867_v45, %s2410_s6 }
 0x578   : > { %1269 = vrot.lane.b32.xlu1 %v2867_v45, %s2411_s12  ;;  %s3063_s12 = sld [smem:[#allocation32_spill]] }
 0x57e   : > { %v1840_v60 = vld [vmem:[%s3063_s12] ss:$0 sm:$0xff] }
 0x59c   : > { %1094 = vadd.xlane.f32.xlu1 %v1093_v31 }
 0x5ad   : > { %1439 = vrot.lane.b32.xlu1 %v2867_v45, %s2412_s30  ;;  %v1533_v45 = vld [vmem:[%s3061_s10 + $0x8] sm:$0xff]  ;;  %s1843_s30 = sshll.u32 %s2503_s25, 7  ;;  %s2416_s25 = smov [#allocation14]  }
 0x5ae   : > { %v1986_v46 = vpack.c.bf16 %v1533_v45, %v1532_v44  ;;  %s2940_s29 = scalar_lea.hbm %s3064_s13, %s1843_s30  ;;  %s2318_s26 = sshll.u32 %s2416_s25, 4  ;;  %s2319_s26 = int_to_ptr.vmem [resolvable:$false] %s2318_s26 }
 0x5af   : > { %s2320_s20 = scalar_lea.vmem %s2319_s26, 256  ;;  %p2321_p13 = scmp.lt.s32.totalorder %s2942_s1, %s2319_s26 }
 0x5b0   : > { %1987 = vmatpush3.bf16.msra.mxu0 %v1986_v46  ;;  %p2322_p9 = scmp.lt.s32.totalorder %s2320_s20, %s2314_s9 }
 0x5b1   : > { %1988 = vmatprep.subr.bf16.mxu0 %v2407_v0 }
 0x5b2   : > { %p2323_p3 = por %p2322_p9, %p2321_p13 }
 0x5b4   : > { %p2324_p5 = pnand %p2323_p3, %p2317_p1 }
 0x5e6   : > { %v1266_v32 = vpop.xlane.xlu0 %1265 }
 0x5ea   : > { %v1100_v33 = vpop.permute.xlu0 %1099 }
 0x5eb   : > { %1932 = vmatpush3.msra.mxu1 %v1100_v33 }
 0x5ec   : > { %1941 = vmatprep.subr.mxu1 %v2409_v1 }
 0x5f4   : > { %v1436_v34 = vpop.xlane.xlu1 %1435 }
 0x5f8   : > { %v1270_v35 = vpop.permute.xlu1 %1269 }
 0x629   : > { %v1095_v36 = vpop.xlane.xlu1 %1094 }
 0x62a   : > { %2104 = vrcp.f32 %v1095_v36 }
 0x62b   : > { %2106 = vrcp.f32 %v1266_v32 }
 0x62c   : > { %2108 = vrcp.f32 %v1436_v34 }
 0x62d   : > { %v1440_v42 = vpop.permute.xlu1 %1439 }
 0x634   : > { %v2105_v37 = vpop.eup %2104 }
 0x635   : > { %v1097_v38 = vmul.f32 %v2105_v37, %v1092_v30  ;;  %v2107_v39 = vpop.eup %2106 }
 0x636   : > { %v1268_v40 = vmul.f32 %v2107_v39, %v1263_v17  ;;  %v2109_v41 = vpop.eup %2108 }
 0x637   : > { %1934 = vmatmul.mubr.msk.f32.vlgmr.msra.gmra.mrb[8].mxu1 %vm839_vm2, %v1097_v38  ;;  %v1438_v43 = vmul.f32 %v2109_v41, %v1433_v23 }
 0x638   : > { %1942 = vmatpush3.msra.mxu1 %v1270_v35  ;;  %1943 = vmatprep.mubr.msk.f32.mxu1 %vm2408_vm0, %v2409_v1 }
 0x639   : > { %1951 = vmatprep.subr.mxu1 %v2409_v1 }
 0x63b   : > { %1944 = vmatmul.mubr.msk.f32.vlgmr.msra.gmra.mrb[10].mxu1 %vm839_vm2, %v1268_v40 }
 0x63c   : > { %1952 = vmatpush3.msra.mxu1 %v1440_v42  ;;  %1953 = vmatprep.mubr.msk.f32.mxu1 %vm2408_vm0, %v2409_v1  ;;  %v1535_v1 = vld [vmem:[%s3061_s10 + $0x18] sm:$0xff] }
 0x63d   : > { %v1989_v48 = vpack.c.bf16 %v1535_v1, %v1534_v47 }
 0x63f   : > { %1954 = vmatmul.mubr.msk.f32.vlgmr.msra.gmra.mrb[12].mxu1 %vm839_vm2, %v1438_v43  ;;  %1990 = vmatpush3.bf16.msra.mxu0 %v1989_v48 }
 0x70a   : > { %v1171_v49 = vpop.f32.mrb[8].mxu1 }
 0x70b   : > { %1516 = vrot.lane.b32.xlu0 %v1171_v49, %s2413_s4  ;;  %v1935_v50 = vpop.f32.mrb[9].mxu1 }
 0x70e   : > { %v1341_v51 = vpop.f32.mrb[10].mxu1 }
 0x70f   : > { %1520 = vrot.lane.b32.xlu1 %v1341_v51, %s2414_s27  ;;  %v1945_v52 = vpop.f32.mrb[11].mxu1 }
 0x712   : > { %v1511_v0 = vpop.f32.mrb[12].mxu1 }
 0x713   : > { %1524 = vrot.lane.b32.xlu0 %v1511_v0, %s2415_s28  ;;  %v1955_v53 = vpop.f32.mrb[13].mxu1 }
 0x77d   : > { %v1517_v54 = vpop.permute.xlu0 %1516 }
 0x77e   : > { %v1527_v56 = vsel %vm839_vm2, %v2891_v62, %v1517_v54 }
 0x781   : > { %v1521_v55 = vpop.permute.xlu1 %1520 }
 0x782   : > { %v1529_v57 = vsel %vm1528_vm3, %v1527_v56, %v1521_v55 }
 0x785   : > { %v1525_v58 = vpop.permute.xlu0 %1524 }
 0x786   : > { %v1531_v59 = vsel %vm1530_vm4, %v1529_v57, %v1525_v58 }
 0x787   : > { %1965 = vmatmul.mubr.msk.f32.vlgmr.msra.gmra.mrb[8].mxu0 %vm597_vm1, %v1531_v59 }
 0x85a   : > { %v1612_v61 = vpop.f32.mrb[8].mxu0 }
 0x85b   : > { %v1613_v63 = vadd.f32 %v1840_v60, %v1612_v61  ;;  %v1966_v2 = vpop.f32.mrb[9].mxu0 }
 0x85d   : > { %1616 = vst.msk [vmem:[%s582_s15] sm:$0xff] %vm597_vm1, %v1613_v63 }
 0x85e   : > { %2327 = shalt.err (!%p2324_p5)
}
 0x85f   : > { %s2328_s23 = scalar_lea.hbm %s2940_s29, 128  ;;  %s2332_s4 = scalar_lea.hbm %s3064_s13, 256 }
 0x860   : > { %p2329_p2 = scmp.ne.s32.totalorder %s2940_s29, %s2328_s23  ;;  %p2333_p4 = scmp.lt.u32.totalorder %s2940_s29, %s3064_s13 }
 0x861   : > { %p2334_p0 = scmp.lt.u32.totalorder %s2332_s4, %s2328_s23  ;;  %p2336_p7 = scmp.lt.u32.totalorder %s2328_s23, %s2940_s29 }
 0x862   : > { %p2330_p6 = pnand %p2329_p2, %p3065_p11 }
 0x863   : > { %p2335_p8 = por %p2334_p0, %p2333_p4 }
 0x864   : > { %p2331_p12 = pneg %p2330_p6 }
 0x865   : > { %p2337_p10 = por %p2336_p7, %p2335_p8 }
 0x867   : > { %p2338_p1 = pnand %p2337_p10, %p2331_p12 }
 0x869   : > { %2341 = shalt.err (!%p2338_p1)
}
 0x86a   : > { %2011 = dma.vmem_to_hbm [thread:$0]  (%p3065_p11), %s2942_s1, 128, %s2940_s29, %s1618_s18  }
 0x86b PF: > { %s3066_s16 = sld [smem:[#allocation21_spill]]  ;;  %s3067_s6 = sld [smem:[#allocation23_spill]] }
 0x86c   : > { %p3069_p9 = scmp.ge.s32.totalorder %s2396_s24, 2 }
 0x871   : > { %s1643_s12 = sand.u32 1, %s3066_s16   ;;  %p3068_p13 = scmp.ne.s32.totalorder %s3067_s6, 0 }
 0x872   : > { %s1644_s30 = scalar_lea.sflag [#allocation4], %s1643_s12 }
 0x873   : > { %p2037_p3 = pnand %p3069_p9, %p3068_p13 }
 0x875   : > { %2379 = dma.done.wait (!%p2037_p3), %s1644_s30, 128  }
 0x876   : > { %2381 = vsyncadd (!%p2037_p3), %s1644_s30, 4294967168  ;;  %s3070_s24 = sld [smem:[#allocation24_spill]]  ;;  %s3071_s15 = sld [smem:[#allocation22_spill]] }
 0x877   : > { %s3072_s23 = sld [smem:[#allocation26_spill]]  ;;  %s3073_s21 = smov %s2388_s22 }
 0x87c   : > { %p32_p5 = scmp.ge.s32.totalorder %s3070_s24, 4   ;;  %s3074_s22 = smov %s3071_s15 }
 0x87e   :  { %34 = sbr.rel (!%p32_p5) target bundleno = 18 (0x12), region = 165 }
 0x885   :  { %1649 = vsyncpa [#allocation3], 1 }
 0x886   :  { %1651 = vsyncpa [#allocation3 + $0x1], 1 }
 0x887   :  { %1652 = vsyncpa [#allocation6], 1 }
 0x888   :  { %1654 = vsyncpa [#allocation6 + $0x1], 1 }
 0x889   :  { %1655 = vsyncpa [#allocation9], 1 }
 0x88a   :  { %1657 = vsyncpa [#allocation9 + $0x1], 1 }
 0x88b   :  { %1658 = vsyncpa [#allocation12], 1 }
 0x88c   :  { %1659 = vsyncpa [#allocation4], 1 }
 0x88d   :  { %1661 = vsyncpa [#allocation4 + $0x1], 1 }

</bundles_post_ra>
